<compile_context>
chip_gen: v6e
topology: v6e:2x2x1
jax: 0.10.0
libtpu: 0.0.40
codegen_flags: <defaults>
</compile_context>

<pallas_src>
import functools
import math

import jax
import jax.numpy as jnp
from jax import lax
from jax.experimental import pallas as pl
from jax.experimental.pallas import tpu as pltpu

_LN_EPS = 1e-5


def _round_up(x, m):
    return ((x + m - 1) // m) * m


# ---------------------------------------------------------------------------
# Kernels
# ---------------------------------------------------------------------------

def _pos_scale_kernel(x_ref, pos_ref, w1_ref, b1_ref, w2_ref, b2_ref, o_ref):
    """o = pos * MLP(x);  MLP = Linear -> ReLU -> Linear  (the encoder's query_scale)."""
    x = x_ref[...]
    h = jnp.dot(x, w1_ref[...], preferred_element_type=jnp.float32) + b1_ref[...]
    h = jnp.maximum(h, 0.0)
    s = jnp.dot(h.astype(w2_ref.dtype), w2_ref[...],
                preferred_element_type=jnp.float32) + b2_ref[...]
    o_ref[...] = (pos_ref[...].astype(jnp.float32) * s).astype(o_ref.dtype)


def _qkv_kernel(src_ref, pos_ref, wq_ref, wk_ref, wv_ref, bq_ref, bk_ref, bv_ref,
                q_ref, k_ref, v_ref):
    """q = k = src + pos; Q/K/V = Linear(q_in), Linear(k_in), Linear(src)."""
    src = src_ref[...]
    qk_in = (src.astype(jnp.float32) + pos_ref[...].astype(jnp.float32)).astype(src.dtype)
    q_ref[...] = (jnp.dot(qk_in, wq_ref[...], preferred_element_type=jnp.float32)
                  + bq_ref[...]).astype(q_ref.dtype)
    k_ref[...] = (jnp.dot(qk_in, wk_ref[...], preferred_element_type=jnp.float32)
                  + bk_ref[...]).astype(k_ref.dtype)
    v_ref[...] = (jnp.dot(src, wv_ref[...], preferred_element_type=jnp.float32)
                  + bv_ref[...]).astype(v_ref.dtype)


def _attn_kernel(scale, q_ref, k_ref, v_ref, o_ref):
    """Full softmax attention for one (batch, head) pair (no attn/key-padding mask)."""
    q = q_ref[0].astype(jnp.float32)
    k = k_ref[0].astype(jnp.float32)
    v = v_ref[0].astype(jnp.float32)
    # q @ k^T via dot_general (contract last dims; avoids an explicit XLU transpose)
    s = lax.dot_general(q, k, (((1,), (1,)), ((), ())),
                        preferred_element_type=jnp.float32) * scale
    m = jnp.max(s, axis=-1, keepdims=True)
    p = jnp.exp(s - m)
    l = jnp.sum(p, axis=-1, keepdims=True)
    o = jnp.dot(p, v, preferred_element_type=jnp.float32) / l
    o_ref[0] = o.astype(o_ref.dtype)


def _attn_out_ln_kernel(attn_ref, res_ref, wo_ref, bo_ref, g_ref, b_ref, o_ref):
    """attention out-projection + residual + LayerNorm (norm1)."""
    y = jnp.dot(attn_ref[...], wo_ref[...],
                preferred_element_type=jnp.float32) + bo_ref[...]
    x = res_ref[...].astype(jnp.float32) + y          # dropout1 == identity (eval mode)
    mu = jnp.mean(x, axis=-1, keepdims=True)
    d = x - mu
    var = jnp.mean(d * d, axis=-1, keepdims=True)
    xn = d * lax.rsqrt(var + _LN_EPS)
    o_ref[...] = (xn * g_ref[...] + b_ref[...]).astype(o_ref.dtype)


def _ffn_ln_kernel(x_ref, w1_ref, b1_ref, w2_ref, b2_ref, g_ref, b_ref, o_ref):
    """Linear -> ReLU -> Linear + residual + LayerNorm (norm2)."""
    x = x_ref[...]
    h = jnp.maximum(jnp.dot(x, w1_ref[...],
                            preferred_element_type=jnp.float32) + b1_ref[...], 0.0)
    y = jnp.dot(h.astype(w2_ref.dtype), w2_ref[...],
                preferred_element_type=jnp.float32) + b2_ref[...]
    z = x.astype(jnp.float32) + y                     # dropout2 == identity (eval mode)
    mu = jnp.mean(z, axis=-1, keepdims=True)
    d = z - mu
    var = jnp.mean(d * d, axis=-1, keepdims=True)
    zn = d * lax.rsqrt(var + _LN_EPS)
    o_ref[...] = (zn * g_ref[...] + b_ref[...]).astype(o_ref.dtype)


# ---------------------------------------------------------------------------
# pallas_call wrappers
# ---------------------------------------------------------------------------

def _row_call(kernel, row_inputs, params, out_dims, *, tile_m, out_dtype,
              flops=0, transcendentals=0):
    """Row-tiled pallas_call.  `row_inputs` are (R, d_i) arrays tiled over rows with
    cdiv + padding; `params` are small 2-D arrays loaded as full VMEM blocks; each
    output is (R, out_dims[j])."""
    R = row_inputs[0].shape[0]
    tile = min(max(tile_m, 8), _round_up(R, 8))
    tile = _round_up(tile, 8)
    Rp = _round_up(R, tile)
    if Rp != R:
        row_inputs = [jnp.pad(a, ((0, Rp - R), (0, 0))) for a in row_inputs]
    grid = (Rp // tile,)

    in_specs = [pl.BlockSpec((tile, a.shape[1]), lambda i: (i, 0)) for a in row_inputs]
    in_specs += [pl.BlockSpec(p.shape, lambda i: (0, 0)) for p in params]
    out_shape = tuple(jax.ShapeDtypeStruct((Rp, d), out_dtype) for d in out_dims)
    out_specs = [pl.BlockSpec((tile, d), lambda i: (i, 0)) for d in out_dims]
    single = len(out_dims) == 1

    bytes_accessed = 4 * (sum(int(a.size) for a in row_inputs)
                          + sum(int(p.size) for p in params)
                          + sum(Rp * d for d in out_dims))

    res = pl.pallas_call(
        kernel,
        out_shape=out_shape[0] if single else out_shape,
        grid_spec=pltpu.PrefetchScalarGridSpec(
            num_scalar_prefetch=0,
            grid=grid,
            in_specs=in_specs,
            out_specs=out_specs[0] if single else out_specs,
        ),
        compiler_params=pltpu.CompilerParams(
            dimension_semantics=("parallel",)),
        cost_estimate=pl.CostEstimate(flops=int(flops),
                                      transcendentals=int(transcendentals),
                                      bytes_accessed=int(bytes_accessed)),
    )(*row_inputs, *params)

    outs = (res,) if single else tuple(res)
    if Rp != R:
        outs = tuple(o[:R] for o in outs)
    return outs[0] if single else outs


def _attention(q, k, v, *, scale):
    """q, k, v: (B*H, N, dh). One (batch, head) pair per grid step."""
    BH, N, dh = q.shape

    def spec():
        return pl.BlockSpec((1, N, dh), lambda i: (i, 0, 0))

    flops = BH * 4 * N * N * dh
    bytes_accessed = 4 * 4 * BH * N * dh
    return pl.pallas_call(
        functools.partial(_attn_kernel, scale),
        out_shape=jax.ShapeDtypeStruct((BH, N, dh), q.dtype),
        grid_spec=pltpu.PrefetchScalarGridSpec(
            num_scalar_prefetch=0,
            grid=(BH,),
            in_specs=[spec(), spec(), spec()],
            out_specs=spec(),
        ),
        compiler_params=pltpu.CompilerParams(
            dimension_semantics=("parallel",)),
        cost_estimate=pl.CostEstimate(flops=int(flops),
                                      transcendentals=int(BH * N * N),
                                      bytes_accessed=int(bytes_accessed)),
    )(q, k, v)


# ---------------------------------------------------------------------------
# Encoder forward
# ---------------------------------------------------------------------------

def transformer_encoder_forward(src, pos, params, *, nhead, tile_m=512):
    """Pallas forward of TransformerEncoder with plain TransformerEncoderLayer layers.

    src, pos: (N, B, C) in the PyTorch (seq, batch, d_model) convention.
    Returns (output, sgdt_output_list, pos, mask) like the PyTorch module.
    """
    # TODO(synk): src_mask / src_key_padding_mask and the SGDT layer variants
    # (SGDT_module is an external dependency not present in the spec) are not implemented.
    N, B, C = src.shape
    H = nhead
    dh = C // H
    assert dh * H == C
    R = N * B
    dtype = src.dtype
    scale = 1.0 / math.sqrt(dh)

    qs_w1, qs_b1 = params["qs_w1"], params["qs_b1"]
    qs_w2, qs_b2 = params["qs_w2"], params["qs_b2"]

    out2 = src.reshape(R, C)
    pos2 = pos.reshape(R, C)

    def to_heads(x2):
        return x2.reshape(N, B, H, dh).transpose(1, 2, 0, 3).reshape(B * H, N, dh)

    for lp in params["layers"]:
        # pos_scales = query_scale(output); scaled_pos = pos * pos_scales
        scaled_pos2 = _row_call(
            _pos_scale_kernel, [out2, pos2], [qs_w1, qs_b1, qs_w2, qs_b2], [C],
            tile_m=tile_m, out_dtype=dtype, flops=4 * R * C * C)

        # fused Q/K/V projection (q = k = src + scaled_pos, v = src)
        q2, k2, v2 = _row_call(
            _qkv_kernel, [out2, scaled_pos2],
            [lp["wq"], lp["wk"], lp["wv"], lp["bq"], lp["bk"], lp["bv"]],
            [C, C, C], tile_m=tile_m, out_dtype=dtype, flops=6 * R * C * C)

        # multi-head softmax attention
        ah = _attention(to_heads(q2), to_heads(k2), to_heads(v2), scale=scale)
        attn2 = ah.reshape(B, H, N, dh).transpose(2, 0, 1, 3).reshape(R, C)

        # out-projection + residual + LayerNorm (norm1)
        x2 = _row_call(
            _attn_out_ln_kernel, [attn2, out2],
            [lp["wo"], lp["bo"], lp["ln1_g"], lp["ln1_b"]], [C],
            tile_m=tile_m, out_dtype=dtype, flops=2 * R * C * C)

        # FFN + residual + LayerNorm (norm2)
        F_ = lp["w_ff1"].shape[1]
        out2 = _row_call(
            _ffn_ln_kernel, [x2],
            [lp["w_ff1"], lp["b_ff1"], lp["w_ff2"], lp["b_ff2"],
             lp["ln2_g"], lp["ln2_b"]], [C],
            tile_m=tile_m, out_dtype=dtype, flops=4 * R * C * F_)

    output = out2.reshape(N, B, C)
    # TransformerEncoder is constructed with norm=None (default) -> no final norm.
    return output, [], pos, None


# ---------------------------------------------------------------------------
# Parameter init + pure-JAX reference
# ---------------------------------------------------------------------------

def _linear_params(key, n_in, n_out):
    kw, kb = jax.random.split(key)
    bound = 1.0 / math.sqrt(n_in)
    w = jax.random.uniform(kw, (n_in, n_out), jnp.float32, minval=-bound, maxval=bound)
    b = jax.random.uniform(kb, (1, n_out), jnp.float32, minval=-bound, maxval=bound)
    return w, b


def init_encoder_params(key, d_model, nhead, dim_feedforward, num_layers):
    params = {}
    key, k1, k2 = jax.random.split(key, 3)
    params["qs_w1"], params["qs_b1"] = _linear_params(k1, d_model, d_model)
    params["qs_w2"], params["qs_b2"] = _linear_params(k2, d_model, d_model)
    layers = []
    for _ in range(num_layers):
        key, kq, kk, kv, ko, kf1, kf2 = jax.random.split(key, 7)
        lp = {}
        lp["wq"], lp["bq"] = _linear_params(kq, d_model, d_model)
        lp["wk"], lp["bk"] = _linear_params(kk, d_model, d_model)
        lp["wv"], lp["bv"] = _linear_params(kv, d_model, d_model)
        lp["wo"], lp["bo"] = _linear_params(ko, d_model, d_model)
        lp["w_ff1"], lp["b_ff1"] = _linear_params(kf1, d_model, dim_feedforward)
        lp["w_ff2"], lp["b_ff2"] = _linear_params(kf2, dim_feedforward, d_model)
        lp["ln1_g"] = jnp.ones((1, d_model), jnp.float32)
        lp["ln1_b"] = jnp.zeros((1, d_model), jnp.float32)
        lp["ln2_g"] = jnp.ones((1, d_model), jnp.float32)
        lp["ln2_b"] = jnp.zeros((1, d_model), jnp.float32)
        layers.append(lp)
    params["layers"] = layers
    return params


def _layernorm_ref(x, g, b):
    mu = jnp.mean(x, axis=-1, keepdims=True)
    var = jnp.mean((x - mu) ** 2, axis=-1, keepdims=True)
    return (x - mu) / jnp.sqrt(var + _LN_EPS) * g + b


def reference_forward(src, pos, params, *, nhead):
    N, B, C = src.shape
    H = nhead
    dh = C // H
    scale = 1.0 / math.sqrt(dh)
    out = src
    for lp in params["layers"]:
        h = jnp.maximum(out @ params["qs_w1"] + params["qs_b1"], 0.0)
        pos_scales = h @ params["qs_w2"] + params["qs_b2"]
        p = pos * pos_scales
        qk_in = out + p
        q = qk_in @ lp["wq"] + lp["bq"]
        k = qk_in @ lp["wk"] + lp["bk"]
        v = out @ lp["wv"] + lp["bv"]

        def heads(x):
            return x.reshape(N, B, H, dh).transpose(1, 2, 0, 3)   # (B, H, N, dh)

        qh, kh, vh = heads(q), heads(k), heads(v)
        s = jnp.einsum("bhnd,bhmd->bhnm", qh, kh) * scale
        a = jax.nn.softmax(s, axis=-1)
        ah = jnp.einsum("bhnm,bhmd->bhnd", a, vh)
        attn = ah.transpose(2, 0, 1, 3).reshape(N, B, C)
        attn = attn @ lp["wo"] + lp["bo"]
        x = _layernorm_ref(out + attn, lp["ln1_g"], lp["ln1_b"])
        y = jnp.maximum(x @ lp["w_ff1"] + lp["b_ff1"], 0.0) @ lp["w_ff2"] + lp["b_ff2"]
        out = _layernorm_ref(x + y, lp["ln2_g"], lp["ln2_b"])
    return out


if __name__ == "__main__":
    key = jax.random.PRNGKey(0)

    # Small shapes consistent with the module (d_model kept lane-dense at 128).
    d_model, nhead, dim_feedforward, num_enc_layers = 128, 4, 256, 2
    seq_len, batch = 64, 2

    key, ks, kp = jax.random.split(key, 3)
    src = jax.random.normal(ks, (seq_len, batch, d_model), jnp.float32)
    pos = jax.random.normal(kp, (seq_len, batch, d_model), jnp.float32)

    params = init_encoder_params(key, d_model, nhead, dim_feedforward, num_enc_layers)

    out, sgdt_list, pos_out, mask_out = transformer_encoder_forward(
        src, pos, params, nhead=nhead, tile_m=512)
    out = jax.block_until_ready(out)

    ref = reference_forward(src, pos, params, nhead=nhead)
    assert out.shape == (seq_len, batch, d_model)
    assert sgdt_list == [] and mask_out is None
    max_err = float(jnp.max(jnp.abs(out - ref)))
    assert jnp.allclose(out, ref, atol=2e-3, rtol=2e-3), f"mismatch vs reference: {max_err}"

    print("KERNEL_OK")
</pallas_src>

<mosaic_0001>
module attributes {stable_mosaic.version = 11 : i64} {
  func.func @_pos_scale_kernel(%arg0: i32, %arg1: memref<128x128xf32, #tpu.memory_space<vmem>>, %arg2: memref<128x128xf32, #tpu.memory_space<vmem>>, %arg3: memref<128x128xf32, #tpu.memory_space<vmem>>, %arg4: memref<1x128xf32, #tpu.memory_space<vmem>>, %arg5: memref<128x128xf32, #tpu.memory_space<vmem>>, %arg6: memref<1x128xf32, #tpu.memory_space<vmem>>, %arg7: memref<128x128xf32, #tpu.memory_space<vmem>>) attributes {dimension_semantics = [#tpu.dimension_semantics<parallel>], iteration_bounds = array<i64: 1>, scalar_prefetch = 0 : i64, scratch_operands = 0 : i64, tpu.core_type = #tpu.core_type<tc>, window_params = [{transform_indices = @transform_0, window_bounds = array<i64: 128, 128>}, {transform_indices = @transform_1, window_bounds = array<i64: 128, 128>}, {pipeline_mode = #tpu.pipeline_mode<synchronous>, transform_indices = @transform_2, window_bounds = array<i64: 128, 128>}, {pipeline_mode = #tpu.pipeline_mode<synchronous>, transform_indices = @transform_3, window_bounds = array<i64: 1, 128>}, {pipeline_mode = #tpu.pipeline_mode<synchronous>, transform_indices = @transform_4, window_bounds = array<i64: 128, 128>}, {pipeline_mode = #tpu.pipeline_mode<synchronous>, transform_indices = @transform_5, window_bounds = array<i64: 1, 128>}, {transform_indices = @transform_6, window_bounds = array<i64: 128, 128>}]} {
    %c0 = arith.constant 0 : index
    %c0_0 = arith.constant 0 : index
    %0 = vector.load %arg1[%c0, %c0_0] : memref<128x128xf32, #tpu.memory_space<vmem>>, vector<128x128xf32>
    %c0_1 = arith.constant 0 : index
    %c0_2 = arith.constant 0 : index
    %1 = vector.load %arg3[%c0_1, %c0_2] : memref<128x128xf32, #tpu.memory_space<vmem>>, vector<128x128xf32>
    %cst = arith.constant dense<0.000000e+00> : vector<128x128xf32>
    %2 = tpu.matmul %0, %1, %cst {dimension_numbers = #tpu.dot_dimension_numbers<[1], [0], [0], [1], [0, 0, 1, 1], [], []>} : vector<128x128xf32>, vector<128x128xf32>, vector<128x128xf32> -> vector<128x128xf32>
    %c0_3 = arith.constant 0 : index
    %c0_4 = arith.constant 0 : index
    %3 = vector.load %arg4[%c0_3, %c0_4] : memref<1x128xf32, #tpu.memory_space<vmem>>, vector<1x128xf32>
    %4 = vector.broadcast %3 : vector<1x128xf32> to vector<128x128xf32>
    %5 = arith.addf %2, %4 : vector<128x128xf32>
    %cst_5 = arith.constant 0.000000e+00 : f32
    %6 = vector.broadcast %cst_5 : f32 to vector<128x128xf32>
    %7 = arith.maximumf %5, %6 : vector<128x128xf32>
    %c0_6 = arith.constant 0 : index
    %c0_7 = arith.constant 0 : index
    %8 = vector.load %arg5[%c0_6, %c0_7] : memref<128x128xf32, #tpu.memory_space<vmem>>, vector<128x128xf32>
    %cst_8 = arith.constant dense<0.000000e+00> : vector<128x128xf32>
    %9 = tpu.matmul %7, %8, %cst_8 {dimension_numbers = #tpu.dot_dimension_numbers<[1], [0], [0], [1], [0, 0, 1, 1], [], []>} : vector<128x128xf32>, vector<128x128xf32>, vector<128x128xf32> -> vector<128x128xf32>
    %c0_9 = arith.constant 0 : index
    %c0_10 = arith.constant 0 : index
    %10 = vector.load %arg6[%c0_9, %c0_10] : memref<1x128xf32, #tpu.memory_space<vmem>>, vector<1x128xf32>
    %11 = vector.broadcast %10 : vector<1x128xf32> to vector<128x128xf32>
    %12 = arith.addf %9, %11 : vector<128x128xf32>
    %c0_11 = arith.constant 0 : index
    %c0_12 = arith.constant 0 : index
    %13 = vector.load %arg2[%c0_11, %c0_12] : memref<128x128xf32, #tpu.memory_space<vmem>>, vector<128x128xf32>
    %14 = arith.mulf %13, %12 : vector<128x128xf32>
    %c0_13 = arith.constant 0 : index
    %c0_14 = arith.constant 0 : index
    %15 = vector.load %arg7[%c0_13, %c0_14] : memref<128x128xf32, #tpu.memory_space<vmem>>, vector<128x128xf32>
    tpu.vector_store %arg7[%c0_13, %c0_14], %14 {strides = array<i32>} : memref<128x128xf32, #tpu.memory_space<vmem>>, vector<128x128xf32>,
    return
  }
  func.func @transform_0(%arg0: i32) -> (i32, i32) {
    %c0_i32 = arith.constant 0 : i32
    %c0_i32_0 = arith.constant 0 : i32
    return %arg0, %c0_i32 : i32, i32
  }
  func.func @transform_1(%arg0: i32) -> (i32, i32) {
    %c0_i32 = arith.constant 0 : i32
    %c0_i32_0 = arith.constant 0 : i32
    return %arg0, %c0_i32 : i32, i32
  }
  func.func @transform_2(%arg0: i32) -> (i32, i32) {
    %c0_i32 = arith.constant 0 : i32
    %c0_i32_0 = arith.constant 0 : i32
    %c0_i32_1 = arith.constant 0 : i32
    return %c0_i32, %c0_i32_0 : i32, i32
  }
  func.func @transform_3(%arg0: i32) -> (i32, i32) {
    %c0_i32 = arith.constant 0 : i32
    %c0_i32_0 = arith.constant 0 : i32
    %c0_i32_1 = arith.constant 0 : i32
    return %c0_i32, %c0_i32_0 : i32, i32
  }
  func.func @transform_4(%arg0: i32) -> (i32, i32) {
    %c0_i32 = arith.constant 0 : i32
    %c0_i32_0 = arith.constant 0 : i32
    %c0_i32_1 = arith.constant 0 : i32
    return %c0_i32, %c0_i32_0 : i32, i32
  }
  func.func @transform_5(%arg0: i32) -> (i32, i32) {
    %c0_i32 = arith.constant 0 : i32
    %c0_i32_0 = arith.constant 0 : i32
    %c0_i32_1 = arith.constant 0 : i32
    return %c0_i32, %c0_i32_0 : i32, i32
  }
  func.func @transform_6(%arg0: i32) -> (i32, i32) {
    %c0_i32 = arith.constant 0 : i32
    %c0_i32_0 = arith.constant 0 : i32
    return %arg0, %c0_i32 : i32, i32
  }
}

</mosaic_0001>

<bundles_post_ra>
// kernel: tpu_custom_call.1
= control target key start
LH: loop header
LB: loop body
LE: loop exit
PB: predicated region body
PF: predicated region fallthrough
CT: control target
= control target key end

     0   :  { %11 = vsyncpa [#allocation3], 0  ;;  %s903_s0 = inlined_call_operand.hbm [shape: f32[128,128], index: 0, kind: input, shape index: {}]   ;;  %s904_s1 = inlined_call_operand.hbm [shape: f32[128,128], index: 1, kind: input, shape index: {}]   ;;  %s905_s2 = inlined_call_operand.hbm [shape: f32[128,128], index: 2, kind: input, shape index: {}]   ;;  %s906_s3 = inlined_call_operand.vmem [shape: f32[1,128], index: 3, kind: input, shape index: {}]   ;;  %s907_s4 = inlined_call_operand.hbm [shape: f32[128,128], index: 4, kind: input, shape index: {}]   ;;  %s908_s5 = inlined_call_operand.vmem [shape: f32[1,128], index: 5, kind: input, shape index: {}]   ;;  %s909_s6 = inlined_call_operand.hbm [shape: f32[128,128], index: 6, kind: output, shape index: {}]  }
   0x1   :  { %12 = vsyncpa [#allocation6], 0 }
   0x2   :  { %13 = vsyncpa [#allocation9], 0 }
   0x3   :  { %14 = vsyncpa [#allocation4], 0  ;;  %s807_s21 = smov [#allocation5]   ;;  %s808_s23 = smov [#allocation2]  }
   0x4   :  { %s32_s22 = sshll.u32 %s807_s21, 4  ;;  %s20_s24 = sshll.u32 %s808_s23, 4  ;;  %s33_s22 = int_to_ptr.vmem [resolvable:$true] %s32_s22  ;;  %s21_s24 = int_to_ptr.vmem [resolvable:$true] %s20_s24 }
   0x5   :  { %s707_s25 = scalar_lea.vmem %s33_s22, 2048  ;;  %p712_p1 = scmp.lt.s32.totalorder %s33_s22, %s33_s22 }
   0x6   :  { %p708_p0 = scmp.ne.s32.totalorder %s33_s22, %s707_s25  ;;  %p713_p2 = scmp.lt.s32.totalorder %s707_s25, %s707_s25 }
   0x8   :  { %p714_p3 = por %p713_p2, %p712_p1 }
   0xa   :  { %p715_p4 = pnand %p714_p3, %p708_p0 }
   0xc   :  { %718 = shalt.err (!%p715_p4)
}
   0xd   :  { %s809_s26 = smov 128   ;;  %s810_s27 = smov 8  }
   0xe   :  { %38 = dma.hbm_to_vmem [thread:$0]  %s904_s1, 2048, %s33_s22, [#allocation6], %s809_s26, %s809_s26, %s810_s27  }
   0xf   :  { %s727_s30 = scalar_lea.vmem %s21_s24, 2048  ;;  %p732_p6 = scmp.lt.s32.totalorder %s21_s24, %s21_s24 }
  0x10   :  { %p728_p5 = scmp.ne.s32.totalorder %s21_s24, %s727_s30  ;;  %p733_p7 = scmp.lt.s32.totalorder %s727_s30, %s727_s30 }
  0x12   :  { %p734_p8 = por %p733_p7, %p732_p6 }
  0x14   :  { %p735_p9 = pnand %p734_p8, %p728_p5 }
  0x16   :  { %738 = shalt.err (!%p735_p9)
}
  0x17   :  { %26 = dma.hbm_to_vmem [thread:$0]  %s903_s0, 2048, %s21_s24, [#allocation3], %s809_s26, %s809_s26, %s810_s27  }
  0x18   :  { %s811_s9 = smov [#allocation7]   ;;  %s812_s11 = smov [#allocation8]  }
  0x19   :  { %s44_s10 = sshll.u32 %s811_s9, 4  ;;  %s58_s12 = sshll.u32 %s812_s11, 4  ;;  %s45_s10 = int_to_ptr.vmem [resolvable:$true] %s44_s10  ;;  %s59_s12 = int_to_ptr.vmem [resolvable:$true] %s58_s12 }
  0x1a   :  { %s747_s1 = scalar_lea.vmem %s45_s10, 2048  ;;  %p752_p11 = scmp.lt.s32.totalorder %s45_s10, %s45_s10 }
  0x1b   :  { %p748_p10 = scmp.ne.s32.totalorder %s45_s10, %s747_s1  ;;  %p753_p12 = scmp.lt.s32.totalorder %s747_s1, %s747_s1 }
  0x1d   :  { %p754_p13 = por %p753_p12, %p752_p11 }
  0x1f   :  { %p755_p0 = pnand %p754_p13, %p748_p10 }
  0x21   :  { %758 = shalt.err (!%p755_p0)
}
  0x22   :  { %50 = dma.hbm_to_vmem [thread:$0]  %s905_s2, 2048, %s45_s10, [#allocation6], %s809_s26, %s809_s26, %s810_s27  }
  0x23   :  { %s767_s0 = scalar_lea.vmem %s59_s12, 2048  ;;  %p772_p2 = scmp.lt.s32.totalorder %s59_s12, %s59_s12 }
  0x24   :  { %p768_p1 = scmp.ne.s32.totalorder %s59_s12, %s767_s0  ;;  %p773_p3 = scmp.lt.s32.totalorder %s767_s0, %s767_s0 }
  0x26   :  { %p774_p4 = por %p773_p3, %p772_p2 }
  0x28   :  { %p775_p5 = pnand %p774_p4, %p768_p1 }
  0x2a   :  { %778 = shalt.err (!%p775_p5)
}
  0x2b   :  { %64 = dma.hbm_to_vmem [thread:$0]  %s907_s4, 2048, %s59_s12, [#allocation9], %s809_s26, %s809_s26, %s810_s27  }
  0x2c   :  { %799 = dma.done.wait [#allocation3], 2048  }
  0x2d   :  { %800 = vsyncadd [#allocation3], 4294965248 }
  0x2e   :  { %801 = dma.done.wait [#allocation6], 4096  }
  0x2f   :  { %802 = vsyncadd [#allocation6], 4294963200 }
  0x30   :  { %803 = dma.done.wait [#allocation9], 2048  }
  0x31   :  { %804 = vsyncadd [#allocation9], 4294965248  ;;  %v110_v0 = vld [vmem:[#allocation7 + $0x78] sm:$0xff]  ;;  %v109_v1 = vld [vmem:[#allocation7 + $0x70] sm:$0xff] }
  0x32   :  { %580 = vmatprep.subr.mxu0 %v110_v0  ;;  %v108_v2 = vld [vmem:[#allocation7 + $0x68] sm:$0xff]  ;;  %v107_v3 = vld [vmem:[#allocation7 + $0x60] sm:$0xff]  ;;  %v106_v5 = vld [vmem:[#allocation7 + $0x58] sm:$0xff] }
  0x33   :  { %581 = vmatpush3.msra.mxu0 %v110_v0  ;;  %v79_v4 = vld [vmem:[#allocation2] sm:$0xff]  ;;  %v105_v6 = vld [vmem:[#allocation7 + $0x50] sm:$0xff]  ;;  %v104_v7 = vld [vmem:[#allocation7 + $0x48] sm:$0xff] }
  0x34   :  { %582 = vmatprep.subr.mxu0 %v109_v1  ;;  %612 = vmatprep.mubr.f32.mxu0 %v79_v4  ;;  %v294_v8 = vld [vmem:[#allocation8 + $0x78] sm:$0xff]  ;;  %v293_v9 = vld [vmem:[#allocation8 + $0x70] sm:$0xff]  ;;  %v103_v10 = vld [vmem:[#allocation7 + $0x40] sm:$0xff] }
  0x35   :  { %583 = vmatpush3.msra.mxu0 %v109_v1  ;;  %636 = vmatprep.subr.mxu1 %v294_v8  ;;  %v292_v11 = vld [vmem:[#allocation8 + $0x68] sm:$0xff]  ;;  %v102_v12 = vld [vmem:[#allocation7 + $0x38] sm:$0xff]  ;;  %v291_v13 = vld [vmem:[#allocation8 + $0x60] sm:$0xff] }
  0x36   :  { %584 = vmatprep.subr.mxu0 %v108_v2  ;;  %637 = vmatpush3.msra.mxu1 %v294_v8  ;;  %v101_v14 = vld [vmem:[#allocation7 + $0x30] sm:$0xff]  ;;  %v290_v15 = vld [vmem:[#allocation8 + $0x58] sm:$0xff]  ;;  %v100_v16 = vld [vmem:[#allocation7 + $0x28] sm:$0xff] }
  0x37   :  { %585 = vmatpush3.msra.mxu0 %v108_v2  ;;  %638 = vmatprep.subr.mxu1 %v293_v9  ;;  %v289_v17 = vld [vmem:[#allocation8 + $0x50] sm:$0xff]  ;;  %v99_v18 = vld [vmem:[#allocation7 + $0x20] sm:$0xff]  ;;  %v288_v19 = vld [vmem:[#allocation8 + $0x48] sm:$0xff] }
  0x38   :  { %586 = vmatprep.subr.mxu0 %v107_v3  ;;  %639 = vmatpush3.msra.mxu1 %v293_v9  ;;  %v98_v20 = vld [vmem:[#allocation7 + $0x18] sm:$0xff]  ;;  %v287_v21 = vld [vmem:[#allocation8 + $0x40] sm:$0xff]  ;;  %v97_v22 = vld [vmem:[#allocation7 + $0x10] sm:$0xff] }
  0x39   :  { %587 = vmatpush3.msra.mxu0 %v107_v3  ;;  %640 = vmatprep.subr.mxu1 %v292_v11  ;;  %v286_v23 = vld [vmem:[#allocation8 + $0x38] sm:$0xff]  ;;  %v96_v24 = vld [vmem:[#allocation7 + $0x8] sm:$0xff]  ;;  %v285_v25 = vld [vmem:[#allocation8 + $0x30] sm:$0xff] }
  0x3a   :  { %588 = vmatprep.subr.mxu0 %v106_v5  ;;  %641 = vmatpush3.msra.mxu1 %v292_v11  ;;  %v95_v26 = vld [vmem:[#allocation7] sm:$0xff]  ;;  %v284_v27 = vld [vmem:[#allocation8 + $0x28] sm:$0xff]  ;;  %v81_v30 = vld [vmem:[#allocation2 + $0x10] sm:$0xff] }
  0x3b   :  { %589 = vmatpush3.msra.mxu0 %v106_v5  ;;  %642 = vmatprep.subr.mxu1 %v291_v13  ;;  %v80_v28 = vld [vmem:[#allocation2 + $0x8] sm:$0xff]  ;;  %v283_v29 = vld [vmem:[#allocation8 + $0x20] sm:$0xff]  ;;  %v82_v31 = vld [vmem:[#allocation2 + $0x18] sm:$0xff] }
  0x3c   :  { %590 = vmatprep.subr.mxu0 %v105_v6  ;;  %643 = vmatpush3.msra.mxu1 %v291_v13  ;;  %v83_v32 = vld [vmem:[#allocation2 + $0x20] sm:$0xff]  ;;  %v84_v33 = vld [vmem:[#allocation2 + $0x28] sm:$0xff]  ;;  %v85_v34 = vld [vmem:[#allocation2 + $0x30] sm:$0xff] }
  0x3d   :  { %591 = vmatpush3.msra.mxu0 %v105_v6  ;;  %644 = vmatprep.subr.mxu1 %v290_v15  ;;  %v86_v35 = vld [vmem:[#allocation2 + $0x38] sm:$0xff]  ;;  %v87_v36 = vld [vmem:[#allocation2 + $0x40] sm:$0xff]  ;;  %v88_v37 = vld [vmem:[#allocation2 + $0x48] sm:$0xff] }
  0x3e   :  { %592 = vmatprep.subr.mxu0 %v104_v7  ;;  %645 = vmatpush3.msra.mxu1 %v290_v15  ;;  %v89_v38 = vld [vmem:[#allocation2 + $0x50] sm:$0xff]  ;;  %v90_v39 = vld [vmem:[#allocation2 + $0x58] sm:$0xff]  ;;  %v91_v40 = vld [vmem:[#allocation2 + $0x60] sm:$0xff] }
  0x3f   :  { %593 = vmatpush3.msra.mxu0 %v104_v7  ;;  %646 = vmatprep.subr.mxu1 %v289_v17  ;;  %v92_v41 = vld [vmem:[#allocation2 + $0x68] sm:$0xff]  ;;  %v93_v42 = vld [vmem:[#allocation2 + $0x70] sm:$0xff]  ;;  %v94_v43 = vld [vmem:[#allocation2 + $0x78] sm:$0xff] }
  0x40   :  { %594 = vmatprep.subr.mxu0 %v103_v10  ;;  %647 = vmatpush3.msra.mxu1 %v289_v17  ;;  %v282_v44 = vld [vmem:[#allocation8 + $0x18] sm:$0xff]  ;;  %v281_v45 = vld [vmem:[#allocation8 + $0x10] sm:$0xff]  ;;  %v280_v46 = vld [vmem:[#allocation8 + $0x8] sm:$0xff] }
  0x41   :  { %595 = vmatpush3.msra.mxu0 %v103_v10  ;;  %648 = vmatprep.subr.mxu1 %v288_v19  ;;  %v279_v47 = vld [vmem:[#allocation8] sm:$0xff] }
  0x42   :  { %596 = vmatprep.subr.mxu0 %v102_v12  ;;  %649 = vmatpush3.msra.mxu1 %v288_v19  ;;  %v514_v48 = vld [vmem:[%s906_s3] ss:$0 sm:$0xff] }
  0x43   :  { %597 = vmatpush3.msra.mxu0 %v102_v12  ;;  %650 = vmatprep.subr.mxu1 %v287_v21 }
  0x44   :  { %598 = vmatprep.subr.mxu0 %v101_v14  ;;  %651 = vmatpush3.msra.mxu1 %v287_v21 }
  0x45   :  { %599 = vmatpush3.msra.mxu0 %v101_v14  ;;  %652 = vmatprep.subr.mxu1 %v286_v23 }
  0x46   :  { %600 = vmatprep.subr.mxu0 %v100_v16  ;;  %653 = vmatpush3.msra.mxu1 %v286_v23 }
  0x47   :  { %601 = vmatpush3.msra.mxu0 %v100_v16  ;;  %654 = vmatprep.subr.mxu1 %v285_v25 }
  0x48   :  { %602 = vmatprep.subr.mxu0 %v99_v18  ;;  %655 = vmatpush3.msra.mxu1 %v285_v25 }
  0x49   :  { %603 = vmatpush3.msra.mxu0 %v99_v18  ;;  %656 = vmatprep.subr.mxu1 %v284_v27 }
  0x4a   :  { %604 = vmatprep.subr.mxu0 %v98_v20  ;;  %657 = vmatpush3.msra.mxu1 %v284_v27 }
  0x4b   :  { %605 = vmatpush3.msra.mxu0 %v98_v20  ;;  %658 = vmatprep.subr.mxu1 %v283_v29 }
  0x4c   :  { %606 = vmatprep.subr.mxu0 %v97_v22  ;;  %659 = vmatpush3.msra.mxu1 %v283_v29 }
  0x4d   :  { %607 = vmatpush3.msra.mxu0 %v97_v22  ;;  %660 = vmatprep.subr.mxu1 %v282_v44 }
  0x4e   :  { %608 = vmatprep.subr.mxu0 %v96_v24  ;;  %661 = vmatpush3.msra.mxu1 %v282_v44 }
  0x4f   :  { %609 = vmatpush3.msra.mxu0 %v96_v24  ;;  %662 = vmatprep.subr.mxu1 %v281_v45 }
  0x50   :  { %610 = vmatprep.subr.mxu0 %v95_v26  ;;  %663 = vmatpush3.msra.mxu1 %v281_v45 }
  0x51   :  { %611 = vmatpush3.msra.mxu0 %v95_v26  ;;  %664 = vmatprep.subr.mxu1 %v280_v46 }
  0x52   :  { %613 = vmatmul.mubr.f32.vlgmr.msra.gmra.mxu0 %v80_v28  ;;  %665 = vmatpush3.msra.mxu1 %v280_v46  ;;  %v449_v46 = vld [vmem:[#allocation5 + $0x10] sm:$0xff] }
  0x53   :  { %615 = vmatprep.mubr.f32.mxu0 %v81_v30  ;;  %666 = vmatprep.subr.mxu1 %v279_v47 }
  0x54   :  { %667 = vmatpush3.msra.mxu1 %v279_v47 }
  0x56   :  { %616 = vmatmul.mubr.f32.gmra.mxu0 %v82_v31 }
  0x57   :  { %618 = vmatprep.mubr.f32.mxu0 %v83_v32 }
  0x5a   :  { %619 = vmatmul.mubr.f32.gmra.mxu0 %v84_v33  ;;  %v879_v33 = vld [vmem:[%s908_s5] ss:$0 sm:$0xff]  ;;  %s813_s5 = smov [#allocation10]  }
  0x5b   :  { %621 = vmatprep.mubr.f32.mxu0 %v85_v34  ;;  %s500_s18 = sshll.u32 %s813_s5, 4  ;;  %s501_s18 = int_to_ptr.vmem [resolvable:$true] %s500_s18 }
  0x5c   :  { %s779_s19 = scalar_lea.vmem %s501_s18, 2048  ;;  %p784_p7 = scmp.lt.s32.totalorder %s501_s18, %s501_s18 }
  0x5d   :  { %p780_p6 = scmp.ne.s32.totalorder %s501_s18, %s779_s19  ;;  %p785_p8 = scmp.lt.s32.totalorder %s779_s19, %s779_s19 }
  0x5e   :  { %622 = vmatmul.mubr.f32.gmra.mxu0 %v86_v35  ;;  %v448_v35 = vld [vmem:[#allocation5 + $0x8] sm:$0xff] }
  0x5f   :  { %624 = vmatprep.mubr.f32.mxu0 %v87_v36  ;;  %p786_p9 = por %p785_p8, %p784_p7 }
  0x61   :  { %p787_p10 = pnand %p786_p9, %p780_p6 }
  0x62   :  { %625 = vmatmul.mubr.f32.gmra.mxu0 %v88_v37 }
  0x63   :  { %627 = vmatprep.mubr.f32.mxu0 %v89_v38  ;;  %v447_v38 = vld [vmem:[#allocation5] sm:$0xff] }
  0x66   :  { %628 = vmatmul.mubr.f32.gmra.mxu0 %v90_v39 }
  0x67   :  { %630 = vmatprep.mubr.f32.mxu0 %v91_v40 }
  0x6a   :  { %631 = vmatmul.mubr.f32.gmra.mxu0 %v92_v41 }
  0x6b   :  { %633 = vmatprep.mubr.f32.mxu0 %v93_v42  ;;  %v450_v42 = vld [vmem:[#allocation5 + $0x18] sm:$0xff] }
  0x6e   :  { %634 = vmatmul.mubr.f32.gmra.mxu0 %v94_v43 }
 0x112   :  { %v614_v49 = vpop.f32.mrf.mxu0 }
 0x113   :  { %v190_v50 = vadd.f32 %v614_v49, %v514_v48 }
 0x114   :  { %v184_v51 = vpop.f32.mrf.mxu0 }
 0x115   :  { %v185_v52 = vadd.f32 %v514_v48, %v184_v51  ;;  %v264_v55 = vmax.f32 %v190_v50, 0.0  ;;  %v452_v50 = vld [vmem:[#allocation5 + $0x28] sm:$0xff] }
 0x116   :  { %v617_v53 = vpop.f32.mrf.mxu0 }
 0x117   :  { %v263_v54 = vmax.f32 %v185_v52, 0.0  ;;  %v200_v56 = vadd.f32 %v617_v53, %v514_v48 }
 0x118   :  { %v194_v57 = vpop.f32.mrf.mxu0 }
 0x119   :  { %v195_v58 = vadd.f32 %v514_v48, %v194_v57  ;;  %668 = vmatprep.mubr.f32.mxu1 %v263_v54  ;;  %v266_v61 = vmax.f32 %v200_v56, 0.0  ;;  %v451_v54 = vld [vmem:[#allocation5 + $0x20] sm:$0xff] }
 0x11a   :  { %v620_v59 = vpop.f32.mrf.mxu0  ;;  %669 = vmatmul.mubr.f32.vlgmr.msra.gmra.mxu1 %v264_v55 }
 0x11b   :  { %v265_v60 = vmax.f32 %v195_v58, 0.0  ;;  %v210_v62 = vadd.f32 %v620_v59, %v514_v48  ;;  %v454_v58 = vld [vmem:[#allocation5 + $0x38] sm:$0xff] }
 0x11c   :  { %v204_v63 = vpop.f32.mrf.mxu0 }
 0x11d   :  { %v205_v0 = vadd.f32 %v514_v48, %v204_v63  ;;  %671 = vmatprep.mubr.f32.mxu1 %v265_v60  ;;  %v268_v3 = vmax.f32 %v210_v62, 0.0  ;;  %v453_v62 = vld [vmem:[#allocation5 + $0x30] sm:$0xff] }
 0x11e   :  { %v623_v1 = vpop.f32.mrf.mxu0  ;;  %672 = vmatmul.mubr.f32.gmra.mxu1 %v266_v61 }
 0x11f   :  { %v267_v2 = vmax.f32 %v205_v0, 0.0  ;;  %v220_v4 = vadd.f32 %v623_v1, %v514_v48 }
 0x120   :  { %v214_v5 = vpop.f32.mrf.mxu0 }
 0x121   :  { %v215_v6 = vadd.f32 %v514_v48, %v214_v5  ;;  %674 = vmatprep.mubr.f32.mxu1 %v267_v2  ;;  %v270_v9 = vmax.f32 %v220_v4, 0.0  ;;  %v456_v2 = vld [vmem:[#allocation5 + $0x48] sm:$0xff] }
 0x122   :  { %v626_v7 = vpop.f32.mrf.mxu0  ;;  %675 = vmatmul.mubr.f32.gmra.mxu1 %v268_v3 }
 0x123   :  { %v269_v8 = vmax.f32 %v215_v6, 0.0  ;;  %v230_v10 = vadd.f32 %v626_v7, %v514_v48  ;;  %v455_v6 = vld [vmem:[#allocation5 + $0x40] sm:$0xff] }
 0x124   :  { %v224_v11 = vpop.f32.mrf.mxu0 }
 0x125   :  { %v225_v12 = vadd.f32 %v514_v48, %v224_v11  ;;  %677 = vmatprep.mubr.f32.mxu1 %v269_v8  ;;  %v272_v15 = vmax.f32 %v230_v10, 0.0  ;;  %v458_v10 = vld [vmem:[#allocation5 + $0x58] sm:$0xff] }
 0x126   :  { %v629_v13 = vpop.f32.mrf.mxu0  ;;  %678 = vmatmul.mubr.f32.gmra.mxu1 %v270_v9 }
 0x127   :  { %v271_v14 = vmax.f32 %v225_v12, 0.0  ;;  %v240_v16 = vadd.f32 %v629_v13, %v514_v48 }
 0x128   :  { %v234_v17 = vpop.f32.mrf.mxu0 }
 0x129   :  { %v235_v18 = vadd.f32 %v514_v48, %v234_v17  ;;  %680 = vmatprep.mubr.f32.mxu1 %v271_v14  ;;  %v274_v21 = vmax.f32 %v240_v16, 0.0  ;;  %v457_v14 = vld [vmem:[#allocation5 + $0x50] sm:$0xff] }
 0x12a   :  { %v632_v19 = vpop.f32.mrf.mxu0  ;;  %681 = vmatmul.mubr.f32.gmra.mxu1 %v272_v15 }
 0x12b   :  { %v273_v20 = vmax.f32 %v235_v18, 0.0  ;;  %v250_v22 = vadd.f32 %v632_v19, %v514_v48  ;;  %v460_v18 = vld [vmem:[#allocation5 + $0x68] sm:$0xff] }
 0x12c   :  { %v244_v23 = vpop.f32.mrf.mxu0 }
 0x12d   :  { %v245_v24 = vadd.f32 %v514_v48, %v244_v23  ;;  %683 = vmatprep.mubr.f32.mxu1 %v273_v20  ;;  %v276_v27 = vmax.f32 %v250_v22, 0.0  ;;  %v459_v22 = vld [vmem:[#allocation5 + $0x60] sm:$0xff] }
 0x12e   :  { %v635_v25 = vpop.f32.mrf.mxu0  ;;  %684 = vmatmul.mubr.f32.gmra.mxu1 %v274_v21 }
 0x12f   :  { %v275_v26 = vmax.f32 %v245_v24, 0.0  ;;  %v260_v28 = vadd.f32 %v635_v25, %v514_v48 }
 0x130   :  { %v254_v29 = vpop.f32.mrf.mxu0 }
 0x131   :  { %v255_v30 = vadd.f32 %v514_v48, %v254_v29  ;;  %686 = vmatprep.mubr.f32.mxu1 %v275_v26  ;;  %v278_v32 = vmax.f32 %v260_v28, 0.0  ;;  %v462_v26 = vld [vmem:[#allocation5 + $0x78] sm:$0xff] }
 0x132   :  { %687 = vmatmul.mubr.f32.gmra.mxu1 %v276_v27 }
 0x133   :  { %v277_v31 = vmax.f32 %v255_v30, 0.0  ;;  %v461_v30 = vld [vmem:[#allocation5 + $0x70] sm:$0xff] }
 0x135   :  { %689 = vmatprep.mubr.f32.mxu1 %v277_v31 }
 0x136   :  { %690 = vmatmul.mubr.f32.gmra.mxu1 %v278_v32 }
 0x1da   :  { %v670_v34 = vpop.f32.mrf.mxu1 }
 0x1db   :  { %v374_v36 = vadd.f32 %v670_v34, %v879_v33 }
 0x1dc   :  { %v368_v37 = vpop.f32.mrf.mxu1 }
 0x1dd   :  { %v464_v39 = vmul.f32 %v448_v35, %v374_v36  ;;  %v369_v40 = vadd.f32 %v879_v33, %v368_v37 }
 0x1de   :  { %v673_v41 = vpop.f32.mrf.mxu1 }
 0x1df   :  { %480 = vst [vmem:[#allocation10 + $0x8] sm:$0xff] %v464_v39  ;;  %v463_v43 = vmul.f32 %v447_v38, %v369_v40  ;;  %v384_v44 = vadd.f32 %v673_v41, %v879_v33 }
 0x1e0   :  { %v378_v45 = vpop.f32.mrf.mxu1 }
 0x1e1   :  { %479 = vst [vmem:[#allocation10] sm:$0xff] %v463_v43  ;;  %v466_v47 = vmul.f32 %v450_v42, %v384_v44  ;;  %v379_v48 = vadd.f32 %v879_v33, %v378_v45 }
 0x1e2   :  { %v676_v49 = vpop.f32.mrf.mxu1 }
 0x1e3   :  { %482 = vst [vmem:[#allocation10 + $0x18] sm:$0xff] %v466_v47  ;;  %v465_v51 = vmul.f32 %v449_v46, %v379_v48  ;;  %v394_v52 = vadd.f32 %v676_v49, %v879_v33 }
 0x1e4   :  { %v388_v53 = vpop.f32.mrf.mxu1 }
 0x1e5   :  { %481 = vst [vmem:[#allocation10 + $0x10] sm:$0xff] %v465_v51  ;;  %v468_v55 = vmul.f32 %v452_v50, %v394_v52  ;;  %v389_v56 = vadd.f32 %v879_v33, %v388_v53 }
 0x1e6   :  { %v679_v57 = vpop.f32.mrf.mxu1 }
 0x1e7   :  { %484 = vst [vmem:[#allocation10 + $0x28] sm:$0xff] %v468_v55  ;;  %v467_v59 = vmul.f32 %v451_v54, %v389_v56  ;;  %v404_v60 = vadd.f32 %v679_v57, %v879_v33 }
 0x1e8   :  { %v398_v61 = vpop.f32.mrf.mxu1 }
 0x1e9   :  { %483 = vst [vmem:[#allocation10 + $0x20] sm:$0xff] %v467_v59  ;;  %v470_v63 = vmul.f32 %v454_v58, %v404_v60  ;;  %v399_v0 = vadd.f32 %v879_v33, %v398_v61 }
 0x1ea   :  { %v682_v1 = vpop.f32.mrf.mxu1 }
 0x1eb   :  { %486 = vst [vmem:[#allocation10 + $0x38] sm:$0xff] %v470_v63  ;;  %v469_v3 = vmul.f32 %v453_v62, %v399_v0  ;;  %v414_v4 = vadd.f32 %v682_v1, %v879_v33 }
 0x1ec   :  { %v408_v5 = vpop.f32.mrf.mxu1 }
 0x1ed   :  { %485 = vst [vmem:[#allocation10 + $0x30] sm:$0xff] %v469_v3  ;;  %v472_v7 = vmul.f32 %v456_v2, %v414_v4  ;;  %v409_v8 = vadd.f32 %v879_v33, %v408_v5 }
 0x1ee   :  { %v685_v9 = vpop.f32.mrf.mxu1 }
 0x1ef   :  { %488 = vst [vmem:[#allocation10 + $0x48] sm:$0xff] %v472_v7  ;;  %v471_v11 = vmul.f32 %v455_v6, %v409_v8  ;;  %v424_v12 = vadd.f32 %v685_v9, %v879_v33 }
 0x1f0   :  { %v418_v13 = vpop.f32.mrf.mxu1 }
 0x1f1   :  { %487 = vst [vmem:[#allocation10 + $0x40] sm:$0xff] %v471_v11  ;;  %v474_v15 = vmul.f32 %v458_v10, %v424_v12  ;;  %v419_v16 = vadd.f32 %v879_v33, %v418_v13 }
 0x1f2   :  { %v688_v17 = vpop.f32.mrf.mxu1 }
 0x1f3   :  { %490 = vst [vmem:[#allocation10 + $0x58] sm:$0xff] %v474_v15  ;;  %v473_v19 = vmul.f32 %v457_v14, %v419_v16  ;;  %v434_v20 = vadd.f32 %v688_v17, %v879_v33 }
 0x1f4   :  { %v428_v21 = vpop.f32.mrf.mxu1 }
 0x1f5   :  { %489 = vst [vmem:[#allocation10 + $0x50] sm:$0xff] %v473_v19  ;;  %v476_v23 = vmul.f32 %v460_v18, %v434_v20  ;;  %v429_v24 = vadd.f32 %v879_v33, %v428_v21 }
 0x1f6   :  { %v691_v25 = vpop.f32.mrf.mxu1 }
 0x1f7   :  { %492 = vst [vmem:[#allocation10 + $0x68] sm:$0xff] %v476_v23  ;;  %v475_v27 = vmul.f32 %v459_v22, %v429_v24  ;;  %v444_v28 = vadd.f32 %v691_v25, %v879_v33 }
 0x1f8   :  { %v438_v29 = vpop.f32.mrf.mxu1 }
 0x1f9   :  { %491 = vst [vmem:[#allocation10 + $0x60] sm:$0xff] %v475_v27  ;;  %v478_v31 = vmul.f32 %v462_v26, %v444_v28  ;;  %v439_v32 = vadd.f32 %v879_v33, %v438_v29 }
 0x1fb   :  { %494 = vst [vmem:[#allocation10 + $0x78] sm:$0xff] %v478_v31  ;;  %v477_v34 = vmul.f32 %v461_v30, %v439_v32 }
 0x1fd   :  { %493 = vst [vmem:[#allocation10 + $0x70] sm:$0xff] %v477_v34 }
 0x1fe   :  { %790 = shalt.err (!%p787_p10)
}
 0x1ff   :  { %506 = dma.vmem_to_hbm [thread:$0]  %s501_s18, 2048, %s909_s6, [#allocation4], %s809_s26, %s809_s26, %s810_s27  }
 0x200   :  { %805 = dma.done.wait [#allocation4], 2048  }
 0x201   :  { %806 = vsyncadd [#allocation4], 4294965248 }
 0x202   :  { %510 = vsyncpa [#allocation3], 1 }
 0x203   :  { %511 = vsyncpa [#allocation6], 1 }
 0x204   :  { %512 = vsyncpa [#allocation9], 1 }
 0x205   :  { %513 = vsyncpa [#allocation4], 1 }

</bundles_post_ra>
